<compile_context>
chip_gen: v7x
topology: tpu7x:2x2x1
jax: 0.10.0
libtpu: 0.0.40
codegen_flags: <defaults>
</compile_context>

<pallas_src>
import jax
import jax.numpy as jnp
from jax import lax
from jax.experimental import pallas as pl
from jax.experimental.pallas import tpu as pltpu


# ----------------------------------------------------------------------------
# The fused CFGCN kernel (one batch element per grid step)
# ----------------------------------------------------------------------------
def _make_cfgcn_kernel(ip):
    """ip = SpatialGCN inter_plane (= planes // 2)."""
    def kernel(x_ref, loc_ref,
               wkvq_ref, bkvq_ref, wswg_ref, bswg_ref, wout_ref, bout_ref,
               mup_ref,
               wphi_ref, bphi_ref, wth_ref, bth_ref,
               wadj_ref, badj_ref, wwg_ref, bwg_ref,
               w3_ref, b3_ref, wfa_ref, wfb_ref, bfin_ref,
               o_ref):
        x = x_ref[0]                                               # (P, HW) f32
        locs = loc_ref[0]                                          # (P, hwl) f32

        # ---- SpatialGCN on the small local feature (y=None path) ----------
        # stacked k/v/q 1x1 conv: single load of locs, one MXU pass
        kvq = jnp.dot(wkvq_ref[...], locs,
                      preferred_element_type=jnp.float32) + bkvq_ref[...]
        k = kvq[0 * ip:1 * ip]                                     # (ip, hwl)
        v = kvq[1 * ip:2 * ip]
        q = kvq[2 * ip:3 * ip]
        # A = softmax(q @ v^T, axis=-1)  (f32 softmax, EUP reciprocal)
        a = lax.dot_general(q, v, (((1,), (1,)), ((), ())),
                            preferred_element_type=jnp.float32)    # (ip, ip)
        a = a - jnp.max(a, axis=-1, keepdims=True)
        e = jnp.exp(a)
        a = e * pl.reciprocal(jnp.sum(e, axis=-1, keepdims=True), approx=True)
        # bmm(k^T, A).T  ==  A^T @ k
        av = lax.dot_general(a, k, (((0,), (0,)), ((), ())),
                             preferred_element_type=jnp.float32)   # (ip, hwl)
        # conv_wg (1x1, BN folded)
        avw = jnp.dot(wswg_ref[...], av,
                      preferred_element_type=jnp.float32) + bswg_ref[...]
        # out conv (+BN folded) + residual + relu
        sg = jnp.dot(wout_ref[...], avw,
                     preferred_element_type=jnp.float32) + bout_ref[...] + locs
        sg = jnp.maximum(sg, 0.0)                                  # (P, hwl)

        # ---- bilinear upsample (align_corners=True) as a matmul -----------
        loc_up = jnp.dot(sg, mup_ref[...],
                         preferred_element_type=jnp.float32)       # (P, HW)

        # ---- global (feature) graph reasoning branch ----------------------
        xb = x.astype(jnp.bfloat16)
        # x_sqz = BN(phi(x)),  b = BN(theta(x))
        xs = jnp.dot(wphi_ref[...], xb,
                     preferred_element_type=jnp.float32) + bphi_ref[...]   # (c1,HW)
        bm = jnp.dot(wth_ref[...], xb,
                     preferred_element_type=jnp.float32) + bth_ref[...]    # (c2,HW)
        # z_idt = x_sqz @ b^T                      (c1, c2)
        z_idt = lax.dot_general(xs, bm, (((1,), (1,)), ((), ())),
                                preferred_element_type=jnp.float32)
        # z = BN(conv_adj(z_idt^T))^T + z_idt      (BN scale folded into wadj)
        zt = lax.dot_general(wadj_ref[...], z_idt, (((1,), (1,)), ((), ())),
                             preferred_element_type=jnp.float32) + badj_ref[...]
        z = z_idt + zt.T                                           # (c1, c2)
        # z = BN(conv_wg(z))
        z = jnp.dot(wwg_ref[...], z,
                    preferred_element_type=jnp.float32) + bwg_ref[...]
        # y = z @ b
        y = jnp.dot(z, bm, preferred_element_type=jnp.float32)     # (c1, HW)

        # ---- tail: conv3+bn3+relu residual, x*local+x, final split conv ---
        g = jnp.dot(w3_ref[...], y.astype(jnp.bfloat16),
                    preferred_element_type=jnp.float32) + b3_ref[...]
        g = jnp.maximum(x + g, 0.0)
        slf = x * loc_up + x                                       # VPU, f32
        # final conv over cat(slf, g) expressed as a split matmul (no concat)
        out = (jnp.dot(wfa_ref[...], slf.astype(jnp.bfloat16),
                       preferred_element_type=jnp.float32)
               + jnp.dot(wfb_ref[...], g.astype(jnp.bfloat16),
                         preferred_element_type=jnp.float32)
               + bfin_ref[...])
        o_ref[0] = out
    return kernel


# ----------------------------------------------------------------------------
# pallas_call wrapper: grid=(N,), per-batch (1, C, HW) blocks + whole weights
# ----------------------------------------------------------------------------
def _batched_pallas(kernel, n, batched_in, const_in, out_c, out_hw):
    in_specs = []
    args = []
    for a in batched_in:
        in_specs.append(pl.BlockSpec((1,) + a.shape[1:],
                                     lambda b: (b, 0, 0)))
        args.append(a)
    for w in const_in:
        in_specs.append(pl.BlockSpec(w.shape,
                                     lambda b, _nd=w.ndim: (0,) * _nd))
        args.append(w)
    return pl.pallas_call(
        kernel,
        out_shape=jax.ShapeDtypeStruct((n, out_c, out_hw), jnp.float32),
        grid=(n,),
        in_specs=in_specs,
        out_specs=pl.BlockSpec((1, out_c, out_hw), lambda b: (b, 0, 0)),
        compiler_params=pltpu.CompilerParams(
            dimension_semantics=("parallel",)),   # batch is independent
    )(*args)


# ----------------------------------------------------------------------------
# Plain-JAX glue: depthwise stride-2 3x3 conv + folded BN
# ----------------------------------------------------------------------------
def depthwise_bn(x, w, s, b):
    y = lax.conv_general_dilated(
        x, w, window_strides=(2, 2), padding=((1, 1), (1, 1)),
        dimension_numbers=("NCHW", "OIHW", "NCHW"),
        feature_group_count=x.shape[1])
    return y * s[None, :, None, None] + b[None, :, None, None]


# ----------------------------------------------------------------------------
# Bilinear (align_corners=True) upsample expressed as an interpolation matrix
# ----------------------------------------------------------------------------
def _axis_interp_matrix(n_in, n_out):
    pos = jnp.linspace(0.0, float(n_in - 1), n_out)            # src coords
    lo = jnp.floor(pos).astype(jnp.int32)
    hi = jnp.minimum(lo + 1, n_in - 1)
    w_hi = pos - lo.astype(jnp.float32)
    idx = jnp.arange(n_out)
    m = jnp.zeros((n_out, n_in), jnp.float32)
    m = m.at[idx, lo].add(1.0 - w_hi)
    m = m.at[idx, hi].add(w_hi)
    return m                                                    # (n_out, n_in)


def _upsample_matrix(hl, wl, H, W):
    uh = _axis_interp_matrix(hl, H)                             # (H, hl)
    uw = _axis_interp_matrix(wl, W)                             # (W, wl)
    # out_flat = kron(uh, uw) @ in_flat  ->  (H*W, hl*wl); return its transpose
    return jnp.kron(uh, uw).T                                   # (hl*wl, H*W)


# ----------------------------------------------------------------------------
# Parameters (eval-mode BN folded to scale/bias; scale folded into weights)
# ----------------------------------------------------------------------------
def init_params(key, planes=16, ratio=4):
    state = {"k": key}

    def nk():
        state["k"], sub = jax.random.split(state["k"])
        return sub

    def w(shape, scale=0.1):
        return scale * jax.random.normal(nk(), shape, jnp.float32)

    def bcol(c):
        return 0.05 * jax.random.normal(nk(), (c, 1), jnp.float32)

    def bn(c, eps=1e-5):
        gamma = 1.0 + 0.1 * jax.random.normal(nk(), (c,), jnp.float32)
        beta = 0.05 * jax.random.normal(nk(), (c,), jnp.float32)
        mean = 0.05 * jax.random.normal(nk(), (c,), jnp.float32)
        var = 1.0 + 0.1 * jnp.abs(jax.random.normal(nk(), (c,), jnp.float32))
        s = gamma / jnp.sqrt(var + eps)
        b = beta - mean * s
        return s.reshape(-1, 1), b.reshape(-1, 1)

    P = planes
    c1 = P // ratio * 2          # phi / conv_wg channels
    c2 = P // ratio              # theta / conv_adj channels
    ip = P // 2                  # SpatialGCN inter_plane

    kp = {}
    # phi / theta (1x1, bias=False) + BN: fold BN scale into the weight (bf16)
    phi_w = w((c1, P)); phi_s, phi_b = bn(c1)
    kp["wphi"] = (phi_s * phi_w).astype(jnp.bfloat16); kp["bphi"] = phi_b
    th_w = w((c2, P)); th_s, th_b = bn(c2)
    kp["wtheta"] = (th_s * th_w).astype(jnp.bfloat16); kp["btheta"] = th_b
    # conv_adj / conv_wg (1x1 Conv1d, bias=False) + BN1d (tiny: keep f32)
    adj_w = w((c2, c2)); adj_s, adj_b = bn(c2)
    kp["wadj"] = adj_s * adj_w; kp["badj"] = adj_b
    wg_w = w((c1, c1)); wg_s, wg_b = bn(c1)
    kp["wwg"] = wg_s * wg_w; kp["bwg"] = wg_b
    # conv3 + bn3
    c3_w = w((P, c1)); c3_s, c3_b = bn(P)
    kp["w3"] = (c3_s * c3_w).astype(jnp.bfloat16); kp["b3"] = c3_b
    # final conv (2P -> P, bias=False) + BN, split into two P-column halves
    fw = w((P, 2 * P)); f_s, f_b = bn(P)
    fw = f_s * fw
    kp["wfa"] = fw[:, :P].astype(jnp.bfloat16)
    kp["wfb"] = fw[:, P:].astype(jnp.bfloat16)
    kp["bfinal"] = f_b

    # local: 3x [depthwise stride-2 3x3 conv (bias=False) + BN]
    kp["local"] = []
    for _ in range(3):
        dw = w((P, 1, 3, 3))
        s, b = bn(P)
        kp["local"].append((dw, s.reshape(-1), b.reshape(-1)))

    # SpatialGCN (y=None path) — everything folded for the fused kernel
    k_w, k_b = w((ip, P)), bcol(ip)
    v_w, v_b = w((ip, P)), bcol(ip)
    q_w, q_b = w((ip, P)), bcol(ip)
    swg_w = w((ip, ip)); swg_s, swg_b = bn(ip)
    out_w = w((P, ip)); out_cb = bcol(P); out_s, out_b = bn(P)
    kp["sgcn"] = {
        "wkvq": jnp.concatenate([k_w, v_w, q_w], axis=0),     # (3*ip, P)
        "bkvq": jnp.concatenate([k_b, v_b, q_b], axis=0),     # (3*ip, 1)
        "wwg": swg_s * swg_w, "bwg": swg_b,
        "wout": out_s * out_w,
        "bout": out_s * out_cb + out_b,                       # fold conv bias+BN
    }
    return kp


# ----------------------------------------------------------------------------
# Forward (featdecode=None path): depthwise convs in JAX, rest in ONE kernel
# ----------------------------------------------------------------------------
def cfgcn_forward(feat, kp):
    N, P, H, W = feat.shape
    HW = H * W
    x3 = feat.reshape(N, P, HW)                 # (N, C, HW): no transpose

    # ---- local (coordinate) branch: 3x depthwise stride-2 conv + BN --------
    loc = feat
    for dw, s, b in kp["local"]:
        loc = depthwise_bn(loc, dw, s, b)
    _, _, hl, wl = loc.shape
    loc3 = loc.reshape(N, P, hl * wl)

    # bilinear-upsample matrix (compile-time constant: static shapes only)
    m_up = _upsample_matrix(hl, wl, H, W)       # (hl*wl, HW) f32

    # ---- everything else fused into a single Pallas kernel -----------------
    sg = kp["sgcn"]
    out3 = _batched_pallas(
        _make_cfgcn_kernel(P // 2), N,
        [x3, loc3],
        [sg["wkvq"], sg["bkvq"], sg["wwg"], sg["bwg"], sg["wout"], sg["bout"],
         m_up,
         kp["wphi"], kp["bphi"], kp["wtheta"], kp["btheta"],
         kp["wadj"], kp["badj"], kp["wwg"], kp["bwg"],
         kp["w3"], kp["b3"], kp["wfa"], kp["wfb"], kp["bfinal"]],
        P, HW)
    return out3.reshape(N, P, H, W)


# ----------------------------------------------------------------------------
if __name__ == "__main__":
    key = jax.random.PRNGKey(0)
    k_param, k_feat = jax.random.split(key)

    PLANES, RATIO = 16, 4
    N, H, W = 2, 16, 16

    params = init_params(k_param, planes=PLANES, ratio=RATIO)
    feat = jax.random.normal(k_feat, (N, PLANES, H, W), jnp.float32)

    fwd = jax.jit(cfgcn_forward)
    out = jax.block_until_ready(fwd(feat, params))
    assert out.shape == (N, PLANES, H, W), out.shape
    assert bool(jnp.all(jnp.isfinite(out)))
    print("KERNEL_OK")
</pallas_src>

<mosaic_0001>
module attributes {stable_mosaic.version = 11 : i64} {
  func.func private @main(%arg0: i32) attributes {dimension_semantics = [#tpu.dimension_semantics<core_parallel>], iteration_bounds = array<i64: 2>, tpu.core_type = #tpu.core_type<sc_scalar_subcore>, window_params = []} {
    return
  }
}

module attributes {stable_mosaic.version = 11 : i64} {
  func.func private @main(%arg0: i32) attributes {dimension_semantics = [#tpu.dimension_semantics<core_parallel>], iteration_bounds = array<i64: 2>, tpu.core_type = #tpu.core_type<sc_scalar_subcore>, window_params = []} {
    return
  }
}

module attributes {stable_mosaic.version = 11 : i64} {
  func.func @kernel(%arg0: i32, %arg1: memref<1x16x256xf32, #tpu.memory_space<vmem>>, %arg2: memref<1x16x4xf32, #tpu.memory_space<vmem>>, %arg3: memref<24x16xf32, #tpu.memory_space<vmem>>, %arg4: memref<24x1xf32, #tpu.memory_space<vmem>>, %arg5: memref<8x8xf32, #tpu.memory_space<vmem>>, %arg6: memref<8x1xf32, #tpu.memory_space<vmem>>, %arg7: memref<16x8xf32, #tpu.memory_space<vmem>>, %arg8: memref<16x1xf32, #tpu.memory_space<vmem>>, %arg9: memref<4x256xf32, #tpu.memory_space<vmem>>, %arg10: memref<8x16xbf16, #tpu.memory_space<vmem>>, %arg11: memref<8x1xf32, #tpu.memory_space<vmem>>, %arg12: memref<4x16xbf16, #tpu.memory_space<vmem>>, %arg13: memref<4x1xf32, #tpu.memory_space<vmem>>, %arg14: memref<4x4xf32, #tpu.memory_space<vmem>>, %arg15: memref<4x1xf32, #tpu.memory_space<vmem>>, %arg16: memref<8x8xf32, #tpu.memory_space<vmem>>, %arg17: memref<8x1xf32, #tpu.memory_space<vmem>>, %arg18: memref<16x8xbf16, #tpu.memory_space<vmem>>, %arg19: memref<16x1xf32, #tpu.memory_space<vmem>>, %arg20: memref<16x16xbf16, #tpu.memory_space<vmem>>, %arg21: memref<16x16xbf16, #tpu.memory_space<vmem>>, %arg22: memref<16x1xf32, #tpu.memory_space<vmem>>, %arg23: memref<1x16x256xf32, #tpu.memory_space<vmem>>) attributes {dimension_semantics = [#tpu.dimension_semantics<parallel>], iteration_bounds = array<i64: 2>, scalar_prefetch = 0 : i64, scratch_operands = 0 : i64, tpu.core_type = #tpu.core_type<tc>, window_params = [{transform_indices = @transform_0, window_bounds = array<i64: 1, 16, 256>}, {transform_indices = @transform_1, window_bounds = array<i64: 1, 16, 4>}, {pipeline_mode = #tpu.pipeline_mode<synchronous>, transform_indices = @transform_2, window_bounds = array<i64: 24, 16>}, {pipeline_mode = #tpu.pipeline_mode<synchronous>, transform_indices = @transform_3, window_bounds = array<i64: 24, 1>}, {pipeline_mode = #tpu.pipeline_mode<synchronous>, transform_indices = @transform_4, window_bounds = array<i64: 8, 8>}, {pipeline_mode = #tpu.pipeline_mode<synchronous>, transform_indices = @transform_5, window_bounds = array<i64: 8, 1>}, {pipeline_mode = #tpu.pipeline_mode<synchronous>, transform_indices = @transform_6, window_bounds = array<i64: 16, 8>}, {pipeline_mode = #tpu.pipeline_mode<synchronous>, transform_indices = @transform_7, window_bounds = array<i64: 16, 1>}, {pipeline_mode = #tpu.pipeline_mode<synchronous>, transform_indices = @transform_8, window_bounds = array<i64: 4, 256>}, {pipeline_mode = #tpu.pipeline_mode<synchronous>, transform_indices = @transform_9, window_bounds = array<i64: 8, 16>}, {pipeline_mode = #tpu.pipeline_mode<synchronous>, transform_indices = @transform_10, window_bounds = array<i64: 8, 1>}, {pipeline_mode = #tpu.pipeline_mode<synchronous>, transform_indices = @transform_11, window_bounds = array<i64: 4, 16>}, {pipeline_mode = #tpu.pipeline_mode<synchronous>, transform_indices = @transform_12, window_bounds = array<i64: 4, 1>}, {pipeline_mode = #tpu.pipeline_mode<synchronous>, transform_indices = @transform_13, window_bounds = array<i64: 4, 4>}, {pipeline_mode = #tpu.pipeline_mode<synchronous>, transform_indices = @transform_14, window_bounds = array<i64: 4, 1>}, {pipeline_mode = #tpu.pipeline_mode<synchronous>, transform_indices = @transform_15, window_bounds = array<i64: 8, 8>}, {pipeline_mode = #tpu.pipeline_mode<synchronous>, transform_indices = @transform_16, window_bounds = array<i64: 8, 1>}, {pipeline_mode = #tpu.pipeline_mode<synchronous>, transform_indices = @transform_17, window_bounds = array<i64: 16, 8>}, {pipeline_mode = #tpu.pipeline_mode<synchronous>, transform_indices = @transform_18, window_bounds = array<i64: 16, 1>}, {pipeline_mode = #tpu.pipeline_mode<synchronous>, transform_indices = @transform_19, window_bounds = array<i64: 16, 16>}, {pipeline_mode = #tpu.pipeline_mode<synchronous>, transform_indices = @transform_20, window_bounds = array<i64: 16, 16>}, {pipeline_mode = #tpu.pipeline_mode<synchronous>, transform_indices = @transform_21, window_bounds = array<i64: 16, 1>}, {transform_indices = @transform_22, window_bounds = array<i64: 1, 16, 256>}]} {
    %c0 = arith.constant 0 : index
    %c0_0 = arith.constant 0 : index
    %c0_1 = arith.constant 0 : index
    %0 = vector.load %arg1[%c0, %c0_0, %c0_1] : memref<1x16x256xf32, #tpu.memory_space<vmem>>, vector<1x16x256xf32>
    %1 = vector.shape_cast %0 : vector<1x16x256xf32> to vector<16x256xf32>
    %c0_2 = arith.constant 0 : index
    %c0_3 = arith.constant 0 : index
    %c0_4 = arith.constant 0 : index
    %2 = vector.load %arg2[%c0_2, %c0_3, %c0_4] : memref<1x16x4xf32, #tpu.memory_space<vmem>>, vector<1x16x4xf32>
    %3 = vector.shape_cast %2 : vector<1x16x4xf32> to vector<16x4xf32>
    %c0_5 = arith.constant 0 : index
    %c0_6 = arith.constant 0 : index
    %4 = vector.load %arg3[%c0_5, %c0_6] : memref<24x16xf32, #tpu.memory_space<vmem>>, vector<24x16xf32>
    %cst = arith.constant dense<0.000000e+00> : vector<24x4xf32>
    %5 = tpu.matmul %4, %3, %cst {dimension_numbers = #tpu.dot_dimension_numbers<[1], [0], [0], [1], [0, 0, 1, 1], [], []>} : vector<24x16xf32>, vector<16x4xf32>, vector<24x4xf32> -> vector<24x4xf32>
    %c0_7 = arith.constant 0 : index
    %c0_8 = arith.constant 0 : index
    %6 = vector.load %arg4[%c0_7, %c0_8] : memref<24x1xf32, #tpu.memory_space<vmem>>, vector<24x1xf32>
    %7 = vector.broadcast %6 : vector<24x1xf32> to vector<24x4xf32>
    %8 = arith.addf %5, %7 : vector<24x4xf32>
    %9 = vector.extract_strided_slice %8 {offsets = [0, 0], sizes = [8, 4], strides = [1, 1]} : vector<24x4xf32> to vector<8x4xf32>
    %10 = vector.extract_strided_slice %8 {offsets = [8, 0], sizes = [8, 4], strides = [1, 1]} : vector<24x4xf32> to vector<8x4xf32>
    %11 = vector.extract_strided_slice %8 {offsets = [16, 0], sizes = [8, 4], strides = [1, 1]} : vector<24x4xf32> to vector<8x4xf32>
    %cst_9 = arith.constant dense<0.000000e+00> : vector<8x8xf32>
    %12 = tpu.matmul %11, %10, %cst_9 {dimension_numbers = #tpu.dot_dimension_numbers<[1], [1], [0], [0], [0, 0, 1, 0], [], []>} : vector<8x4xf32>, vector<8x4xf32>, vector<8x8xf32> -> vector<8x8xf32>
    %cst_10 = arith.constant dense<0xFF800000> : vector<8xf32>
    %13 = vector.multi_reduction <maximumf>, %12, %cst_10 [1] : vector<8x8xf32> to vector<8xf32>
    %14 = vector.shape_cast %13 : vector<8xf32> to vector<8x1xf32>
    %15 = vector.broadcast %14 : vector<8x1xf32> to vector<8x8xf32>
    %16 = arith.subf %12, %15 : vector<8x8xf32>
    %17 = math.exp %16 : vector<8x8xf32>
    %cst_11 = arith.constant dense<0.000000e+00> : vector<8xf32>
    %18 = vector.multi_reduction <add>, %17, %cst_11 [1] : vector<8x8xf32> to vector<8xf32>
    %19 = vector.shape_cast %18 : vector<8xf32> to vector<8x1xf32>
    %20 = tpu.reciprocal %19 {approx = true} : vector<8x1xf32> -> vector<8x1xf32>
    %21 = vector.broadcast %20 : vector<8x1xf32> to vector<8x8xf32>
    %22 = arith.mulf %17, %21 : vector<8x8xf32>
    %cst_12 = arith.constant dense<0.000000e+00> : vector<8x4xf32>
    %23 = tpu.matmul %22, %9, %cst_12 {dimension_numbers = #tpu.dot_dimension_numbers<[0], [0], [1], [1], [0, 1, 1, 1], [], []>} : vector<8x8xf32>, vector<8x4xf32>, vector<8x4xf32> -> vector<8x4xf32>
    %c0_13 = arith.constant 0 : index
    %c0_14 = arith.constant 0 : index
    %24 = vector.load %arg5[%c0_13, %c0_14] : memref<8x8xf32, #tpu.memory_space<vmem>>, vector<8x8xf32>
    %cst_15 = arith.constant dense<0.000000e+00> : vector<8x4xf32>
    %25 = tpu.matmul %24, %23, %cst_15 {dimension_numbers = #tpu.dot_dimension_numbers<[1], [0], [0], [1], [0, 0, 1, 1], [], []>} : vector<8x8xf32>, vector<8x4xf32>, vector<8x4xf32> -> vector<8x4xf32>
    %c0_16 = arith.constant 0 : index
    %c0_17 = arith.constant 0 : index
    %26 = vector.load %arg6[%c0_16, %c0_17] : memref<8x1xf32, #tpu.memory_space<vmem>>, vector<8x1xf32>
    %27 = vector.broadcast %26 : vector<8x1xf32> to vector<8x4xf32>
    %28 = arith.addf %25, %27 : vector<8x4xf32>
    %c0_18 = arith.constant 0 : index
    %c0_19 = arith.constant 0 : index
    %29 = vector.load %arg7[%c0_18, %c0_19] : memref<16x8xf32, #tpu.memory_space<vmem>>, vector<16x8xf32>
    %cst_20 = arith.constant dense<0.000000e+00> : vector<16x4xf32>
    %30 = tpu.matmul %29, %28, %cst_20 {dimension_numbers = #tpu.dot_dimension_numbers<[1], [0], [0], [1], [0, 0, 1, 1], [], []>} : vector<16x8xf32>, vector<8x4xf32>, vector<16x4xf32> -> vector<16x4xf32>
    %c0_21 = arith.constant 0 : index
    %c0_22 = arith.constant 0 : index
    %31 = vector.load %arg8[%c0_21, %c0_22] : memref<16x1xf32, #tpu.memory_space<vmem>>, vector<16x1xf32>
    %32 = vector.broadcast %31 : vector<16x1xf32> to vector<16x4xf32>
    %33 = arith.addf %30, %32 : vector<16x4xf32>
    %34 = arith.addf %33, %3 : vector<16x4xf32>
    %cst_23 = arith.constant 0.000000e+00 : f32
    %35 = vector.broadcast %cst_23 : f32 to vector<16x4xf32>
    %36 = arith.maximumf %34, %35 : vector<16x4xf32>
    %c0_24 = arith.constant 0 : index
    %c0_25 = arith.constant 0 : index
    %37 = vector.load %arg9[%c0_24, %c0_25] : memref<4x256xf32, #tpu.memory_space<vmem>>, vector<4x256xf32>
    %cst_26 = arith.constant dense<0.000000e+00> : vector<16x256xf32>
    %38 = tpu.matmul %36, %37, %cst_26 {dimension_numbers = #tpu.dot_dimension_numbers<[1], [0], [0], [1], [0, 0, 1, 1], [], []>} : vector<16x4xf32>, vector<4x256xf32>, vector<16x256xf32> -> vector<16x256xf32>
    %39 = arith.truncf %1 : vector<16x256xf32> to vector<16x256xbf16>
    %c0_27 = arith.constant 0 : index
    %c0_28 = arith.constant 0 : index
    %40 = vector.load %arg10[%c0_27, %c0_28] : memref<8x16xbf16, #tpu.memory_space<vmem>>, vector<8x16xbf16>
    %cst_29 = arith.constant dense<0.000000e+00> : vector<8x256xf32>
    %41 = tpu.matmul %40, %39, %cst_29 {dimension_numbers = #tpu.dot_dimension_numbers<[1], [0], [0], [1], [0, 0, 1, 1], [], []>} : vector<8x16xbf16>, vector<16x256xbf16>, vector<8x256xf32> -> vector<8x256xf32>
    %c0_30 = arith.constant 0 : index
    %c0_31 = arith.constant 0 : index
    %42 = vector.load %arg11[%c0_30, %c0_31] : memref<8x1xf32, #tpu.memory_space<vmem>>, vector<8x1xf32>
    %43 = vector.broadcast %42 : vector<8x1xf32> to vector<8x256xf32>
    %44 = arith.addf %41, %43 : vector<8x256xf32>
    %c0_32 = arith.constant 0 : index
    %c0_33 = arith.constant 0 : index
    %45 = vector.load %arg12[%c0_32, %c0_33] : memref<4x16xbf16, #tpu.memory_space<vmem>>, vector<4x16xbf16>
    %cst_34 = arith.constant dense<0.000000e+00> : vector<4x256xf32>
    %46 = tpu.matmul %45, %39, %cst_34 {dimension_numbers = #tpu.dot_dimension_numbers<[1], [0], [0], [1], [0, 0, 1, 1], [], []>} : vector<4x16xbf16>, vector<16x256xbf16>, vector<4x256xf32> -> vector<4x256xf32>
    %c0_35 = arith.constant 0 : index
    %c0_36 = arith.constant 0 : index
    %47 = vector.load %arg13[%c0_35, %c0_36] : memref<4x1xf32, #tpu.memory_space<vmem>>, vector<4x1xf32>
    %48 = vector.broadcast %47 : vector<4x1xf32> to vector<4x256xf32>
    %49 = arith.addf %46, %48 : vector<4x256xf32>
    %cst_37 = arith.constant dense<0.000000e+00> : vector<8x4xf32>
    %50 = tpu.matmul %44, %49, %cst_37 {dimension_numbers = #tpu.dot_dimension_numbers<[1], [1], [0], [0], [0, 0, 1, 0], [], []>} : vector<8x256xf32>, vector<4x256xf32>, vector<8x4xf32> -> vector<8x4xf32>
    %c0_38 = arith.constant 0 : index
    %c0_39 = arith.constant 0 : index
    %51 = vector.load %arg14[%c0_38, %c0_39] : memref<4x4xf32, #tpu.memory_space<vmem>>, vector<4x4xf32>
    %cst_40 = arith.constant dense<0.000000e+00> : vector<4x8xf32>
    %52 = tpu.matmul %51, %50, %cst_40 {dimension_numbers = #tpu.dot_dimension_numbers<[1], [1], [0], [0], [0, 0, 1, 0], [], []>} : vector<4x4xf32>, vector<8x4xf32>, vector<4x8xf32> -> vector<4x8xf32>
    %c0_41 = arith.constant 0 : index
    %c0_42 = arith.constant 0 : index
    %53 = vector.load %arg15[%c0_41, %c0_42] : memref<4x1xf32, #tpu.memory_space<vmem>>, vector<4x1xf32>
    %54 = vector.broadcast %53 : vector<4x1xf32> to vector<4x8xf32>
    %55 = arith.addf %52, %54 : vector<4x8xf32>
    %56 = tpu.transpose %55, [1, 0] : vector<4x8xf32> -> vector<8x4xf32>
    %57 = arith.addf %50, %56 : vector<8x4xf32>
    %c0_43 = arith.constant 0 : index
    %c0_44 = arith.constant 0 : index
    %58 = vector.load %arg16[%c0_43, %c0_44] : memref<8x8xf32, #tpu.memory_space<vmem>>, vector<8x8xf32>
    %cst_45 = arith.constant dense<0.000000e+00> : vector<8x4xf32>
    %59 = tpu.matmul %58, %57, %cst_45 {dimension_numbers = #tpu.dot_dimension_numbers<[1], [0], [0], [1], [0, 0, 1, 1], [], []>} : vector<8x8xf32>, vector<8x4xf32>, vector<8x4xf32> -> vector<8x4xf32>
    %c0_46 = arith.constant 0 : index
    %c0_47 = arith.constant 0 : index
    %60 = vector.load %arg17[%c0_46, %c0_47] : memref<8x1xf32, #tpu.memory_space<vmem>>, vector<8x1xf32>
    %61 = vector.broadcast %60 : vector<8x1xf32> to vector<8x4xf32>
    %62 = arith.addf %59, %61 : vector<8x4xf32>
    %cst_48 = arith.constant dense<0.000000e+00> : vector<8x256xf32>
    %63 = tpu.matmul %62, %49, %cst_48 {dimension_numbers = #tpu.dot_dimension_numbers<[1], [0], [0], [1], [0, 0, 1, 1], [], []>} : vector<8x4xf32>, vector<4x256xf32>, vector<8x256xf32> -> vector<8x256xf32>
    %c0_49 = arith.constant 0 : index
    %c0_50 = arith.constant 0 : index
    %64 = vector.load %arg18[%c0_49, %c0_50] : memref<16x8xbf16, #tpu.memory_space<vmem>>, vector<16x8xbf16>
    %65 = arith.truncf %63 : vector<8x256xf32> to vector<8x256xbf16>
    %cst_51 = arith.constant dense<0.000000e+00> : vector<16x256xf32>
    %66 = tpu.matmul %64, %65, %cst_51 {dimension_numbers = #tpu.dot_dimension_numbers<[1], [0], [0], [1], [0, 0, 1, 1], [], []>} : vector<16x8xbf16>, vector<8x256xbf16>, vector<16x256xf32> -> vector<16x256xf32>
    %c0_52 = arith.constant 0 : index
    %c0_53 = arith.constant 0 : index
    %67 = vector.load %arg19[%c0_52, %c0_53] : memref<16x1xf32, #tpu.memory_space<vmem>>, vector<16x1xf32>
    %68 = vector.broadcast %67 : vector<16x1xf32> to vector<16x256xf32>
    %69 = arith.addf %66, %68 : vector<16x256xf32>
    %70 = arith.addf %1, %69 : vector<16x256xf32>
    %cst_54 = arith.constant 0.000000e+00 : f32
    %71 = vector.broadcast %cst_54 : f32 to vector<16x256xf32>
    %72 = arith.maximumf %70, %71 : vector<16x256xf32>
    %73 = arith.mulf %1, %38 : vector<16x256xf32>
    %74 = arith.addf %73, %1 : vector<16x256xf32>
    %c0_55 = arith.constant 0 : index
    %c0_56 = arith.constant 0 : index
    %75 = vector.load %arg20[%c0_55, %c0_56] : memref<16x16xbf16, #tpu.memory_space<vmem>>, vector<16x16xbf16>
    %76 = arith.truncf %74 : vector<16x256xf32> to vector<16x256xbf16>
    %cst_57 = arith.constant dense<0.000000e+00> : vector<16x256xf32>
    %77 = tpu.matmul %75, %76, %cst_57 {dimension_numbers = #tpu.dot_dimension_numbers<[1], [0], [0], [1], [0, 0, 1, 1], [], []>} : vector<16x16xbf16>, vector<16x256xbf16>, vector<16x256xf32> -> vector<16x256xf32>
    %c0_58 = arith.constant 0 : index
    %c0_59 = arith.constant 0 : index
    %78 = vector.load %arg21[%c0_58, %c0_59] : memref<16x16xbf16, #tpu.memory_space<vmem>>, vector<16x16xbf16>
    %79 = arith.truncf %72 : vector<16x256xf32> to vector<16x256xbf16>
    %cst_60 = arith.constant dense<0.000000e+00> : vector<16x256xf32>
    %80 = tpu.matmul %78, %79, %cst_60 {dimension_numbers = #tpu.dot_dimension_numbers<[1], [0], [0], [1], [0, 0, 1, 1], [], []>} : vector<16x16xbf16>, vector<16x256xbf16>, vector<16x256xf32> -> vector<16x256xf32>
    %81 = arith.addf %77, %80 : vector<16x256xf32>
    %c0_61 = arith.constant 0 : index
    %c0_62 = arith.constant 0 : index
    %82 = vector.load %arg22[%c0_61, %c0_62] : memref<16x1xf32, #tpu.memory_space<vmem>>, vector<16x1xf32>
    %83 = vector.broadcast %82 : vector<16x1xf32> to vector<16x256xf32>
    %84 = arith.addf %81, %83 : vector<16x256xf32>
    %c0_63 = arith.constant 0 : index
    %c0_64 = arith.constant 0 : index
    %c0_65 = arith.constant 0 : index
    %85 = vector.load %arg23[%c0_63, %c0_64, %c0_65] : memref<1x16x256xf32, #tpu.memory_space<vmem>>, vector<1x16x256xf32>
    %86 = vector.shape_cast %85 : vector<1x16x256xf32> to vector<16x256xf32>
    %87 = vector.shape_cast %84 : vector<16x256xf32> to vector<1x16x256xf32>
    tpu.vector_store %arg23[%c0_63, %c0_64, %c0_65], %87 {strides = array<i32>} : memref<1x16x256xf32, #tpu.memory_space<vmem>>, vector<1x16x256xf32>,
    return
  }
  func.func @transform_0(%arg0: i32) -> (i32, i32, i32) {
    %c0_i32 = arith.constant 0 : i32
    %c0_i32_0 = arith.constant 0 : i32
    %c0_i32_1 = arith.constant 0 : i32
    return %arg0, %c0_i32, %c0_i32_0 : i32, i32, i32
  }
  func.func @transform_1(%arg0: i32) -> (i32, i32, i32) {
    %c0_i32 = arith.constant 0 : i32
    %c0_i32_0 = arith.constant 0 : i32
    %c0_i32_1 = arith.constant 0 : i32
    return %arg0, %c0_i32, %c0_i32_0 : i32, i32, i32
  }
  func.func @transform_2(%arg0: i32) -> (i32, i32) {
    %c0_i32 = arith.constant 0 : i32
    %c0_i32_0 = arith.constant 0 : i32
    %c0_i32_1 = arith.constant 0 : i32
    return %c0_i32, %c0_i32_0 : i32, i32
  }
  func.func @transform_3(%arg0: i32) -> (i32, i32) {
    %c0_i32 = arith.constant 0 : i32
    %c0_i32_0 = arith.constant 0 : i32
    %c0_i32_1 = arith.constant 0 : i32
    return %c0_i32, %c0_i32_0 : i32, i32
  }
  func.func @transform_4(%arg0: i32) -> (i32, i32) {
    %c0_i32 = arith.constant 0 : i32
    %c0_i32_0 = arith.constant 0 : i32
    %c0_i32_1 = arith.constant 0 : i32
    return %c0_i32, %c0_i32_0 : i32, i32
  }
  func.func @transform_5(%arg0: i32) -> (i32, i32) {
    %c0_i32 = arith.constant 0 : i32
    %c0_i32_0 = arith.constant 0 : i32
    %c0_i32_1 = arith.constant 0 : i32
    return %c0_i32, %c0_i32_0 : i32, i32
  }
  func.func @transform_6(%arg0: i32) -> (i32, i32) {
    %c0_i32 = arith.constant 0 : i32
    %c0_i32_0 = arith.constant 0 : i32
    %c0_i32_1 = arith.constant 0 : i32
    return %c0_i32, %c0_i32_0 : i32, i32
  }
  func.func @transform_7(%arg0: i32) -> (i32, i32) {
    %c0_i32 = arith.constant 0 : i32
    %c0_i32_0 = arith.constant 0 : i32
    %c0_i32_1 = arith.constant 0 : i32
    return %c0_i32, %c0_i32_0 : i32, i32
  }
  func.func @transform_8(%arg0: i32) -> (i32, i32) {
    %c0_i32 = arith.constant 0 : i32
    %c0_i32_0 = arith.constant 0 : i32
    %c0_i32_1 = arith.constant 0 : i32
    return %c0_i32, %c0_i32_0 : i32, i32
  }
  func.func @transform_9(%arg0: i32) -> (i32, i32) {
    %c0_i32 = arith.constant 0 : i32
    %c0_i32_0 = arith.constant 0 : i32
    %c0_i32_1 = arith.constant 0 : i32
    return %c0_i32, %c0_i32_0 : i32, i32
  }
  func.func @transform_10(%arg0: i32) -> (i32, i32) {
    %c0_i32 = arith.constant 0 : i32
    %c0_i32_0 = arith.constant 0 : i32
    %c0_i32_1 = arith.constant 0 : i32
    return %c0_i32, %c0_i32_0 : i32, i32
  }
  func.func @transform_11(%arg0: i32) -> (i32, i32) {
    %c0_i32 = arith.constant 0 : i32
    %c0_i32_0 = arith.constant 0 : i32
    %c0_i32_1 = arith.constant 0 : i32
    return %c0_i32, %c0_i32_0 : i32, i32
  }
  func.func @transform_12(%arg0: i32) -> (i32, i32) {
    %c0_i32 = arith.constant 0 : i32
    %c0_i32_0 = arith.constant 0 : i32
    %c0_i32_1 = arith.constant 0 : i32
    return %c0_i32, %c0_i32_0 : i32, i32
  }
  func.func @transform_13(%arg0: i32) -> (i32, i32) {
    %c0_i32 = arith.constant 0 : i32
    %c0_i32_0 = arith.constant 0 : i32
    %c0_i32_1 = arith.constant 0 : i32
    return %c0_i32, %c0_i32_0 : i32, i32
  }
  func.func @transform_14(%arg0: i32) -> (i32, i32) {
    %c0_i32 = arith.constant 0 : i32
    %c0_i32_0 = arith.constant 0 : i32
    %c0_i32_1 = arith.constant 0 : i32
    return %c0_i32, %c0_i32_0 : i32, i32
  }
  func.func @transform_15(%arg0: i32) -> (i32, i32) {
    %c0_i32 = arith.constant 0 : i32
    %c0_i32_0 = arith.constant 0 : i32
    %c0_i32_1 = arith.constant 0 : i32
    return %c0_i32, %c0_i32_0 : i32, i32
  }
  func.func @transform_16(%arg0: i32) -> (i32, i32) {
    %c0_i32 = arith.constant 0 : i32
    %c0_i32_0 = arith.constant 0 : i32
    %c0_i32_1 = arith.constant 0 : i32
    return %c0_i32, %c0_i32_0 : i32, i32
  }
  func.func @transform_17(%arg0: i32) -> (i32, i32) {
    %c0_i32 = arith.constant 0 : i32
    %c0_i32_0 = arith.constant 0 : i32
    %c0_i32_1 = arith.constant 0 : i32
    return %c0_i32, %c0_i32_0 : i32, i32
  }
  func.func @transform_18(%arg0: i32) -> (i32, i32) {
    %c0_i32 = arith.constant 0 : i32
    %c0_i32_0 = arith.constant 0 : i32
    %c0_i32_1 = arith.constant 0 : i32
    return %c0_i32, %c0_i32_0 : i32, i32
  }
  func.func @transform_19(%arg0: i32) -> (i32, i32) {
    %c0_i32 = arith.constant 0 : i32
    %c0_i32_0 = arith.constant 0 : i32
    %c0_i32_1 = arith.constant 0 : i32
    return %c0_i32, %c0_i32_0 : i32, i32
  }
  func.func @transform_20(%arg0: i32) -> (i32, i32) {
    %c0_i32 = arith.constant 0 : i32
    %c0_i32_0 = arith.constant 0 : i32
    %c0_i32_1 = arith.constant 0 : i32
    return %c0_i32, %c0_i32_0 : i32, i32
  }
  func.func @transform_21(%arg0: i32) -> (i32, i32) {
    %c0_i32 = arith.constant 0 : i32
    %c0_i32_0 = arith.constant 0 : i32
    %c0_i32_1 = arith.constant 0 : i32
    return %c0_i32, %c0_i32_0 : i32, i32
  }
  func.func @transform_22(%arg0: i32) -> (i32, i32, i32) {
    %c0_i32 = arith.constant 0 : i32
    %c0_i32_0 = arith.constant 0 : i32
    %c0_i32_1 = arith.constant 0 : i32
    return %arg0, %c0_i32, %c0_i32_0 : i32, i32, i32
  }
}

</mosaic_0001>

<bundles_post_ra>
// kernel: cfgcn_forward.1
= control target key start
LH: loop header
LB: loop body
LE: loop exit
PB: predicated region body
PF: predicated region fallthrough
CT: control target
= control target key end

     0   :  { %s2506_s0 = inlined_call_operand.vmem [shape: f32[2,16,256], index: 0, kind: input, shape index: {}]   ;;  %s2507_s1 = inlined_call_operand.vmem [shape: f32[2,16,4], index: 1, kind: input, shape index: {}]   ;;  %s2508_s2 = inlined_call_operand.vmem [shape: f32[24,16], index: 2, kind: input, shape index: {}]   ;;  %s2509_s3 = inlined_call_operand.vmem [shape: f32[24,1], index: 3, kind: input, shape index: {}]   ;;  %s2510_s4 = inlined_call_operand.vmem [shape: f32[8,8], index: 4, kind: input, shape index: {}]   ;;  %s2511_s5 = inlined_call_operand.vmem [shape: f32[8,1], index: 5, kind: input, shape index: {}]   ;;  %s2512_s6 = inlined_call_operand.vmem [shape: f32[16,8], index: 6, kind: input, shape index: {}]   ;;  %s2513_s7 = inlined_call_operand.vmem [shape: f32[16,1], index: 7, kind: input, shape index: {}]   ;;  %s2514_s8 = inlined_call_operand.vmem [shape: f32[4,256], index: 8, kind: input, shape index: {}]   ;;  %s2515_s9 = inlined_call_operand.vmem [shape: bf16[8,16], index: 9, kind: input, shape index: {}]   ;;  %s2516_s10 = inlined_call_operand.vmem [shape: f32[8,1], index: 10, kind: input, shape index: {}]   ;;  %s2517_s11 = inlined_call_operand.vmem [shape: bf16[4,16], index: 11, kind: input, shape index: {}]   ;;  %s2518_s12 = inlined_call_operand.vmem [shape: f32[4,1], index: 12, kind: input, shape index: {}]   ;;  %s2519_s13 = inlined_call_operand.vmem [shape: f32[4,4], index: 13, kind: input, shape index: {}]   ;;  %s2520_s14 = inlined_call_operand.vmem [shape: f32[4,1], index: 14, kind: input, shape index: {}]   ;;  %s2521_s15 = inlined_call_operand.vmem [shape: f32[8,8], index: 15, kind: input, shape index: {}]   ;;  %s2522_s16 = inlined_call_operand.vmem [shape: f32[8,1], index: 16, kind: input, shape index: {}]   ;;  %s2523_s17 = inlined_call_operand.vmem [shape: bf16[16,8], index: 17, kind: input, shape index: {}]   ;;  %s2524_s18 = inlined_call_operand.vmem [shape: f32[16,1], index: 18, kind: input, shape index: {}]   ;;  %s2525_s19 = inlined_call_operand.vmem [shape: bf16[16,16], index: 19, kind: input, shape index: {}]   ;;  %s2526_s20 = inlined_call_operand.vmem [shape: bf16[16,16], index: 20, kind: input, shape index: {}]   ;;  %s2527_s21 = inlined_call_operand.vmem [shape: f32[16,1], index: 21, kind: input, shape index: {}]   ;;  %s2528_s22 = inlined_call_operand.vmem [shape: f32[2,16,256], index: 22, kind: output, shape index: {}]  }
   0x1   :  { %2533 = sst [smem:[#allocation2_spill]] %s2506_s0 }
   0x2   :  { %2534 = sst [smem:[#allocation3_spill]] %s2507_s1 }
   0x3   :  { %2535 = sst [smem:[#allocation4_spill]] %s2508_s2 }
   0x4   :  { %2536 = sst [smem:[#allocation5_spill]] %s2509_s3  ;;  %s2285_s3 = smov 0  }
   0x5   :  { %2537 = sst [smem:[#allocation6_spill]] %s2510_s4 }
   0x6   :  { %2538 = sst [smem:[#allocation7_spill]] %s2511_s5 }
   0x7   :  { %2539 = sst [smem:[#allocation8_spill]] %s2512_s6 }
   0x8 LB: > { %s2022_s28 = sadd.s32 4294967295, %s2164_s3   ;;  %p2026_p0 = scmp.ge.s32.totalorder %s2164_s3, 1  ;;  %s2164_s3 = sphi %s2285_s3, %s32_s3  }
   0x9   : > { %p622_p1 = scmp.lt.s32.totalorder %s2164_s3, 3 }
   0xb   : > { %p623_p2 = pnand %p2026_p0, %p622_p1 }
   0xc   : > { %p689_p3 = scmp.lt.s32.totalorder (!%p623_p2), %s2022_s28, 1  ;;  %v2166_v0 = vmov (!%p623_p2), 0.0|0.0   ;;  %s2540_s4 = sld [smem:[#allocation5_spill]] (!%p623_p2)  ;;  %vm2167_vm0 = vmmov (!%p623_p2), 0   ;;  %v2168_v2 = vmov (!%p623_p2), 0.0   ;;  %v2169_v3 = vmov (!%p623_p2), 0  }
   0xd   : > { %626 = sbr.rel (%p623_p2) target bundleno = 3228 (0xc9c), region = 108  ;;  %2127 = vmatprep.subr.bf16.mxu0 (!%p623_p2), %v2166_v0  ;;  %2130 = vmatprep.subr.bf16.mxu1 (!%p623_p2), %v2166_v0  ;;  %s2541_s6 = sld [smem:[#allocation3_spill]] (!%p623_p2)  ;;  %vm732_vm1 = vcmask (!%p623_p2), 130048   ;;  %v1098_v13 = vld [vmem:[%s2513_s7] sm:$0xff] (!%p623_p2)  ;;  %v1099_v14 = vld [vmem:[%s2513_s7 + $0x8] sm:$0xff] (!%p623_p2)  ;;  %vm822_vm2 = vcmask (!%p623_p2), 31744  }
   0xe   : > { %2088 = vmatprep.mubr.msk.f32.mxu0 (!%p623_p2), %vm2167_vm0, %v2168_v2  ;;  %2091 = vmatprep.mubr.msk.f32.mxu1 (!%p623_p2), %vm2167_vm0, %v2168_v2  ;;  %s2542_s27 = sld [smem:[#allocation4_spill]] (!%p623_p2)  ;;  %v1340_v15 = vld [vmem:[%s2518_s12] sm:$0xf] (!%p623_p2)  ;;  %vm899_vm3 = vcmask (!%p623_p2), 64512   ;;  %s2544_s2 = sld [smem:[#allocation6_spill]] (!%p623_p2)  ;;  %vm1204_vm4 = vcmask (!%p623_p2), 1043456  }
   0xf   : > { %2148 = vset.pattern.permute.xlu0 (!%p623_p2), %v2169_v3  ;;  %v1289_v16 = vld [vmem:[%s2516_s10] sm:$0xff] (!%p623_p2)  ;;  %s2546_s24 = sld [smem:[#allocation2_spill]] (!%p623_p2) }
  0x10   : > { %v1461_v17 = vld [vmem:[%s2520_s14] sm:$0xf] (!%p623_p2) }
  0x11   : > { %v1288_v57 = vld [vmem:[%s2515_s9] sm:$0xf] (!%p623_p2) }
  0x12   : > { %v715_v1 = vld [vmem:[%s2540_s4 + $0x8] sm:$0xff] (!%p623_p2)  ;;  %v716_v4 = vld [vmem:[%s2540_s4 + $0x10] sm:$0xff] (!%p623_p2)  ;;  %v714_v10 = vld [vmem:[%s2540_s4] sm:$0xff] (!%p623_p2) }
  0x13   : > { %724 = vperm.xlu0 (!%p623_p2), %2148, %v715_v1   ;;  %v1195_v58 = vld [vmem:[%s2514_s8] sm:$0xff] (!%p623_p2) }
  0x14   : > { %s2549_s28 = smov (!%p689_p3, %s2022_s28), 1  ;;  %v711_v8 = vld [vmem:[%s2542_s27] sm:$0xff]  ;;  %v712_v9 = vld [vmem:[%s2542_s27 + $0x8] sm:$0xff]  ;;  %v713_v11 = vld [vmem:[%s2542_s27 + $0x10] sm:$0xff]  ;;  %v1197_v59 = vcombine.high %v1195_v58, %v1195_v58 }
  0x15   : > { %s2064_s0 = sshll.u32 %s2549_s28, 4  ;;  %v1016_v42 = vld [vmem:[%s2544_s2] sm:$0xff]  ;;  %s2532_s23 = sshll.u32 %s2549_s28, 5 }
  0x16   : > { %s698_s25 = scalar_lea.vmem %s2541_s6, %s2064_s0  ;;  %s2545_s0 = sld [smem:[#allocation8_spill]] }
  0x17   : > { %v2310_v5 = vld [vmem:[%s698_s25] sm:$0xff]  ;;  %v2312_v6 = vld [vmem:[%s698_s25 + $0x8] sm:$0xff]  ;;  %729 = vperm.xlu0 %2148, %v716_v4   ;;  %s2543_s25 = sld [smem:[#allocation7_spill]]  ;;  %s693_s6 = scalar_lea.vmem %s2546_s24, %s2532_s23 }
  0x18   : > { %v2128_v7 = vpack.c.bf16 %v2312_v6, %v2310_v5  ;;  %v2381_v46 = vld [vmem:[%s693_s6 + $0x8] sm:$0xff]  ;;  %v2383_v47 = vld [vmem:[%s693_s6 + $0x18] sm:$0xff]  ;;  %v2385_v48 = vld [vmem:[%s693_s6] sm:$0xff] }
  0x19   : > { %v2387_v49 = vld [vmem:[%s693_s6 + $0x10] sm:$0xff]  ;;  %v1287_v54 = vpack.c.bf16 %v2383_v47, %v2381_v46  ;;  %s2547_s6 = sshll.u32 %s2549_s28, 5 }
  0x1a   : > { %2129 = vmatpush3.bf16.msra.mxu0 %v2128_v7  ;;  %2131 = vmatpush3.bf16.msra.mxu1 %v2128_v7  ;;  %v1286_v56 = vpack.c.bf16 %v2387_v49, %v2385_v48  ;;  %s703_s2 = scalar_lea.vmem %s2528_s22, %s2547_s6 }
  0x1b   : > { %2097 = vmatprep.subr.mxu1 %v2168_v2  ;;  %719 = vperm.xlu0 %2148, %v714_v10  }
  0x1c   : > { %v1096_v45 = vld [vmem:[%s2545_s0] sm:$0xff]  ;;  %v1097_v55 = vld [vmem:[%s2545_s0 + $0x8] sm:$0xff] }
  0x1d   : > { %2089 = vmatmul.mubr.msk.f32.vlgmr.msra.gmra.mrb[0].mxu0 %vm732_vm1, %v711_v8  ;;  %2092 = vmatmul.mubr.msk.f32.vlgmr.msra.gmra.mrb[0].mxu1 %vm732_vm1, %v712_v9  ;;  %v1017_v12 = vld [vmem:[%s2543_s25] sm:$0xff] }
  0x1e   : > { %2094 = vmatprep.mubr.msk.f32.mxu1 %vm2167_vm0, %v2168_v2  ;;  %2114 = vmatprep.mubr.msk.f32.mxu0 %vm899_vm3, %v1096_v45  ;;  %v1577_v45 = vld [vmem:[%s2522_s16] sm:$0xff] }
  0x1f   : > { %1020 = vperm.xlu0 %2148, %v1017_v12  }
  0x21   : > { %2095 = vmatmul.mubr.msk.f32.gmra.mrb[2].mxu1 %vm732_vm1, %v713_v11 }
  0x22   : > { %2099 = vmatprep.mubr.msk.f32.mxu1 %vm2167_vm0, %v2168_v2 }
  0x23   : > { %1102 = vperm.xlu0 %2148, %v1098_v13  }
  0x27   : > { %1107 = vperm.xlu0 %2148, %v1099_v14  }
  0x2b   : > { %1343 = vperm.xlu0 %2148, %v1340_v15  }
  0x2f   : > { %1292 = vperm.xlu0 %2148, %v1289_v16  }
  0x33   : > { %1464 = vperm.xlu0 %2148, %v1461_v17  }
  0x92   : > { %v725_v18 = vpop.permute.xlu0 %724 }
  0x96   : > { %v730_v19 = vpop.permute.xlu0 %729 }
  0x9a   : > { %v720_v26 = vpop.permute.xlu0 %719 }
  0x9e   : > { %v1021_v50 = vpop.permute.xlu0 %1020 }
  0xa2   : > { %v1103_v60 = vpop.permute.xlu0 %1102 }
  0xa6   : > { %v1108_v61 = vpop.permute.xlu0 %1107 }
  0xaa   : > { %v1344_v62 = vpop.permute.xlu0 %1343 }
  0xae   : > { %v1293_v9 = vpop.permute.xlu0 %1292 }
  0xf0   : > { %v808_v20 = vpop.f32.mrb[0].mxu0  ;;  %v813_v21 = vpop.f32.mrb[0].mxu1 }
  0xf1   : > { %v814_v22 = vadd.f32 %v813_v21, %v725_v18  ;;  %v2093_v23 = vpop.f32.mrb[1].mxu1  ;;  %v2090_v24 = vpop.f32.mrb[1].mxu0  ;;  %v809_v29 = vadd.f32 %v808_v20, %v720_v26 }
  0xf3   : > { %2098 = vmatpush3.xpose.msk.msra.mxu1 %vm822_vm2, %v814_v22 }
  0xf4   : > { %v818_v25 = vpop.f32.mrb[2].mxu1  ;;  %2102 = vmatprep.subr.mxu1 %v2168_v2 }
  0xf5   : > { %v819_v27 = vadd.f32 %v818_v25, %v730_v19  ;;  %v2096_v28 = vpop.f32.mrb[3].mxu1 }
  0xf7   : > { %2100 = vmatmul.mubr.msk.f32.vlgmr.msra.gmra.mrb[4].mxu1 %vm822_vm2, %v819_v27 }
  0xf8   : > { %2103 = vmatpush3.msra.mxu1 %v809_v29  ;;  %2104 = vmatprep.mubr.msk.f32.mxu1 %vm2167_vm0, %v2168_v2 }
  0xf9   : > { %2107 = vmatprep.subr.mxu1 %v2168_v2 }
 0x1ca   : > { %v895_v30 = vpop.f32.mrb[4].mxu1 }
 0x1cb   : > { %v2101_v31 = vpop.f32.mrb[5].mxu1  ;;  %v900_v32 = vsel %vm899_vm3, %v895_v30, -inf }
 0x1cc   : > { %901 = vmax.xlane.f32.xlu1 %v900_v32 }
 0x259   : > { %v902_v33 = vpop.xlane.xlu1 %901 }
 0x25a   : > { %v903_v34 = vsub.f32 %v895_v30, %v902_v33 }
 0x25c   : > { %v904_v35 = vmul.f32 1.442695, %v903_v34 }
 0x25e   : > { %2154 = vpow2.f32 %v904_v35 }
 0x268   : > { %v2155_v36 = vpop.eup %2154 }
 0x269   : > { %v906_v37 = vsel %vm899_vm3, %v2155_v36, 0.0 }
 0x26a   : > { %907 = vadd.xlane.f32.xlu1 %v906_v37 }
 0x2f7   : > { %v908_v38 = vpop.xlane.xlu1 %907 }
 0x2f8   : > { %2156 = vrcp.f32 %v908_v38 }
 0x302   : > { %v2157_v39 = vpop.eup %2156 }
 0x303   : > { %v910_v40 = vmul.f32 %v2157_v39, %v2155_v36  ;;  %v1460_v39 = vld [vmem:[%s2519_s13] sm:$0xf] }
 0x305   : > { %911 = vxpose.xlu1.b32.start.end [1/1] (short) (narrow) %v910_v40, 8  ;;  %v1465_v40 = vpop.permute.xlu0 %1464 }
 0x323   : > { %2149 = vset.pattern.permute.xlu1 %v2169_v3 }
 0x324   : > { %1580 = vperm.xlu1 %2149, %v1577_v45  }
 0x385   : > { %v927_v41 = vpop.trf.xlu1 }
 0x386   : > { %2105 = vmatmul.mubr.msk.f32.vlgmr.msra.gmra.mrb[6].mxu1 %vm899_vm3, %v927_v41 }
 0x387   : > { %2109 = vmatprep.mubr.msk.f32.mxu1 %vm2167_vm0, %v2168_v2 }
 0x459   : > { %v1012_v43 = vpop.f32.mrb[6].mxu1 }
 0x45a   : > { %v2106_v44 = vpop.f32.mrb[7].mxu1  ;;  %2108 = vmatpush3.msra.mxu1 %v1012_v43 }
 0x45b   : > { %2110 = vmatmul.mubr.msk.f32.vlgmr.msra.gmra.mrb[8].mxu1 %vm899_vm3, %v1016_v42  ;;  %2042 = vmatprep.subr.msk.mxu1 %vm1204_vm4, %v1197_v59  ;;  %v1740_v44 = vld [vmem:[%s2524_s18] sm:$0xff] }
 0x45c   : > { %1273 = vmatprep.mubr.f32.mxu1 %v2168_v2  ;;  %2043 = vmatpush1.msk.msra.mxu1 %vm1204_vm4, %v1195_v58 }
 0x45d   : > { %1349 = vmatprep.subr.bf16.mxu1 %v1287_v54 }
 0x52e   : > { %v1092_v51 = vpop.f32.mrb[8].mxu1 }
 0x52f   : > { %v1093_v52 = vadd.f32 %v1092_v51, %v1021_v50  ;;  %v2111_v53 = vpop.f32.mrb[9].mxu1  ;;  %v1741_v50 = vld [vmem:[%s2524_s18 + $0x8] sm:$0xff] }
 0x530   : > { %1749 = vperm.xlu1 %2149, %v1741_v50   ;;  %v1936_v51 = vld [vmem:[%s2527_s21 + $0x8] sm:$0xff] }
 0x531   : > { %2112 = vmatprep.subr.mxu0 %v1093_v52 }
 0x532   : > { %2113 = vmatpush3.msra.mxu0 %v1093_v52 }
 0x533   : > { %2115 = vmatmul.mubr.msk.f32.vlgmr.msra.gmra.mrb[2].mxu0 %vm899_vm3, %v1097_v55  ;;  %1298 = vmatprep.subr.bf16.mxu0 %v1287_v54  ;;  %v1576_v54 = vld [vmem:[%s2521_s15] sm:$0xff]  ;;  %v1581_v55 = vpop.permute.xlu1 %1580 }
 0x534   : > { %1299 = vmatpush1.bf16.msra.mxu0 %v1286_v56  ;;  %1330 = vmatprep.mubr.bf16.mxu0 %v2169_v3 }
 0x537   : > { %2046 = vmatmul.mubr.msk.bf16.vlgmr.msra.gmra.mrb[4].mxu0 %vm732_vm1, %v1288_v57 }
 0x606   : > { %v2116_v63 = vpop.f32.mrb[2].mxu0 }
 0x607   : > { %v1182_v0 = vpop.f32.mrb[3].mxu0  ;;  %v1188_v1 = vadd.f32 %v2116_v63, %v1108_v61 }
 0x608   : > { %v1183_v4 = vadd.f32 %v1182_v0, %v1103_v60  ;;  %v2151_v0 = vld [vmem:[%s2523_s17] sm:$0xff]  }
 0x609   : > { %v1192_v11 = vadd.f32 %v1188_v1, %v2312_v6 }
 0x60a   : > { %v1191_v7 = vadd.f32 %v1183_v4, %v2310_v5  ;;  %v1332_v8 = vpop.f32.mrb[4].mxu0  ;;  %v1339_v5 = vld [vmem:[%s2517_s11] sm:$0x3] }
 0x60b   : > { %v1334_v10 = vpop.f32.mrb[5].mxu0  ;;  %v1194_v16 = vmax.f32 %v1192_v11, 0.0  ;;  %v1333_v36 = vadd.f32 %v1332_v8, %v1293_v9 }
 0x60c   : > { %v1193_v12 = vmax.f32 %v1191_v7, 0.0  ;;  %v1335_v13 = vadd.f32 %v1334_v10, %v1293_v9  ;;  %v1336_v14 = vpop.f32.mrb[6].mxu0  ;;  %v1750_v9 = vpop.permute.xlu1 %1749 }
 0x60d   : > { %v1337_v15 = vpop.f32.mrb[7].mxu0 }
 0x60e   : > { %2044 = vmatmul.mubr.msk.f32.vlgmr.msra.gmra.mrb[10].mxu1 %vm822_vm2, %v1193_v12  ;;  %1454 = vmatprep.mubr.f32.mxu0 %v1335_v13 }
 0x60f   : > { %1279 = vmatprep.mubr.f32.mxu1 %v2168_v2  ;;  %1350 = vmatpush1.bf16.msra.mxu1 %v1286_v56 }
 0x610   : > { %2122 = vmatprep.subr.mxu1 %v2168_v2 }
 0x612   : > { %2045 = vmatmul.mubr.msk.f32.gmra.mrb[12].mxu1 %vm822_vm2, %v1194_v16 }
 0x613   : > { %1381 = vmatprep.mubr.bf16.mxu1 %v2169_v3 }
 0x616   : > { %2047 = vmatmul.mubr.msk.bf16.vlgmr.msra.gmra.mrb[16].mxu1 %vm732_vm1, %v1339_v5 }
 0x617   : > { %2124 = vmatprep.mubr.msk.f32.mxu1 %vm2167_vm0, %v2168_v2 }
 0x6e1   : > { %v1275_v6 = vpop.f32.mrb[10].mxu1 }
 0x6e2   : > { %v1277_v17 = vpop.f32.mrb[11].mxu1  ;;  %v1817_v18 = vmul.f32 %v1275_v6, %v2385_v48 }
 0x6e3   : > { %v1818_v19 = vmul.f32 %v1277_v17, %v2381_v46 }
 0x6e4   : > { %v2425_v24 = vadd.f32 %v1817_v18, %v2385_v48 }
 0x6e5   : > { %v1281_v20 = vpop.f32.mrb[12].mxu1  ;;  %v2431_v26 = vadd.f32 %v1818_v19, %v2381_v46 }
 0x6e6   : > { %v1819_v21 = vmul.f32 %v1281_v20, %v2387_v49  ;;  %v1283_v22 = vpop.f32.mrb[13].mxu1 }
 0x6e7   : > { %v1820_v23 = vmul.f32 %v1283_v22, %v2383_v47 }
 0x6e8   : > { %v2428_v25 = vadd.f32 %v1819_v21, %v2387_v49 }
 0x6e9   : > { %v2434_v27 = vadd.f32 %v1820_v23, %v2383_v47  ;;  %v1383_v28 = vpop.f32.mrb[16].mxu1 }
 0x6ea   : > { %v1827_v29 = vpack.c.bf16 %v2428_v25, %v2425_v24  ;;  %v1385_v30 = vpop.f32.mrb[17].mxu1  ;;  %v1384_v34 = vadd.f32 %v1383_v28, %v1344_v62 }
 0x6eb   : > { %v1386_v31 = vadd.f32 %v1385_v30, %v1344_v62  ;;  %v1387_v32 = vpop.f32.mrb[18].mxu1  ;;  %v1828_v33 = vpack.c.bf16 %v2434_v27, %v2431_v26 }
 0x6ec   : > { %v1388_v35 = vpop.f32.mrb[19].mxu1 }
 0x6ed   : > { %1390 = vmatprep.subr.mxu0 %v1386_v31 }
 0x6ee   : > { %1391 = vmatpush1.xpose.msra.mxu0 %v1384_v34 }
 0x6ef   : > { %2117 = vmatprep.subr.mxu0 %v2168_v2 }
 0x6f1   : > { %1455 = vmatmul.mubr.f32.vlgmr.msra.gmra.mrb[8].mxu0 %v1333_v36 }
 0x6f2   : > { %2119 = vmatprep.mubr.msk.f32.mxu0 %vm2167_vm0, %v2168_v2 }
 0x7c4   : > { %v1456_v37 = vpop.f32.mrb[8].mxu0 }
 0x7c5   : > { %v1458_v38 = vpop.f32.mrb[9].mxu0  ;;  %2118 = vmatpush3.xpose.msk.msra.mxu0 %vm822_vm2, %v1456_v37 }
 0x7c6   : > { %2051 = vmatprep.subr.msk.mxu0 %vm1204_vm4, %v1386_v31 }
 0x7c8   : > { %2120 = vmatmul.mubr.msk.f32.vlgmr.msra.gmra.mrb[10].mxu0 %vm822_vm2, %v1460_v39 }
 0x7c9   : > { %2052 = vmatpush1.msk.msra.mxu0 %vm1204_vm4, %v1384_v34  ;;  %1729 = vmatprep.mubr.f32.mxu0 %v2168_v2  ;;  %v1935_v2 = vld [vmem:[%s2527_s21] sm:$0xff] }
 0x7ca   : > { %1939 = vperm.xlu1 %2149, %v1935_v2  }
 0x7ce   : > { %1944 = vperm.xlu1 %2149, %v1936_v51  }
 0x89b   : > { %v1539_v41 = vpop.f32.mrb[10].mxu0 }
 0x89c   : > { %v1540_v42 = vadd.f32 %v1539_v41, %v1465_v40  ;;  %v2121_v43 = vpop.f32.mrb[11].mxu0 }
 0x89e   : > { %1543 = vxpose.xlu0.b32.start.end [1/1] (short) (narrow) %v1540_v42, 8 }
 0x8c7   : > { %1744 = vperm.xlu0 %2148, %v1740_v44  }
 0x91e   : > { %v1559_v52 = vpop.trf.xlu0 }
 0x91f   : > { %v1575_v53 = vadd.f32 %v1559_v52, %v1456_v37 }
 0x921   : > { %2123 = vmatpush3.msra.mxu1 %v1575_v53 }
 0x922   : > { %2125 = vmatmul.mubr.msk.f32.vlgmr.msra.gmra.mrb[14].mxu1 %vm899_vm3, %v1576_v54 }
 0x923   : > { %1798 = vmatprep.mubr.bf16.mxu1 %v2169_v3 }
 0x946   : > { %v1745_v1 = vpop.permute.xlu0 %1744 }
 0x9f5   : > { %v1652_v56 = vpop.f32.mrb[14].mxu1 }
 0x9f6   : > { %v1653_v57 = vadd.f32 %v1652_v56, %v1581_v55  ;;  %v2126_v58 = vpop.f32.mrb[15].mxu1 }
 0x9f8   : > { %2053 = vmatmul.mubr.msk.f32.vlgmr.msra.gmra.mrb[12].mxu0 %vm822_vm2, %v1653_v57 }
 0x9f9   : > { %1873 = vmatprep.mubr.bf16.mxu0 %v2169_v3 }
 0xacb   : > { %v1731_v59 = vpop.f32.mrb[12].mxu0 }
 0xacc   : > { %v1738_v60 = vpack.c.bf16 %v1731_v59, %v1731_v59  ;;  %v1733_v61 = vpop.f32.mrb[13].mxu0 }
 0xacd   : > { %v1739_v62 = vpack.c.bf16 %v1733_v61, %v1733_v61 }
 0xace   : > { %v1761_v63 = vsel %vm1204_vm4, %v1738_v60, 0 }
 0xacf   : > { %2055 = vmatprep.subr.msk.bf16.mxu1 %vm1204_vm4, %v1739_v62 }
 0xad0   : > { %1767 = vmatpush1.bf16.msra.mxu1 %v1761_v63 }
 0xad3   : > { %2056 = vmatmul.mubr.msk.bf16.vlgmr.msra.gmra.mrb[20].mxu1 %vm899_vm3, %v2151_v0 }
 0xba6   : > { %v1800_v4 = vpop.f32.mrb[20].mxu1 }
 0xba7   : > { %v1801_v7 = vadd.f32 %v1800_v4, %v1745_v1  ;;  %v1802_v8 = vpop.f32.mrb[21].mxu1 }
 0xba8   : > { %v1803_v10 = vadd.f32 %v1802_v8, %v1745_v1  ;;  %v1804_v11 = vpop.f32.mrb[22].mxu1 }
 0xba9   : > { %v1809_v12 = vadd.f32 %v1801_v7, %v2385_v48  ;;  %v1805_v13 = vadd.f32 %v1804_v11, %v1750_v9  ;;  %v1806_v14 = vpop.f32.mrb[23].mxu1  ;;  %v2152_v48 = vld [vmem:[%s2526_s20] sm:$0xff]  }
 0xbaa   : > { %v1810_v15 = vadd.f32 %v1803_v10, %v2381_v46  ;;  %v1807_v16 = vadd.f32 %v1806_v14, %v1750_v9  ;;  %v2153_v46 = vld [vmem:[%s2525_s19] sm:$0xff]  }
 0xbab   : > { %v1811_v5 = vadd.f32 %v1805_v13, %v2387_v49  ;;  %v1813_v17 = vmax.f32 %v1809_v12, 0.0 }
 0xbac   : > { %v1812_v6 = vadd.f32 %v1807_v16, %v2383_v47  ;;  %v1814_v19 = vmax.f32 %v1810_v15, 0.0  ;;  %v1940_v47 = vpop.permute.xlu1 %1939 }
 0xbad   : > { %v1815_v18 = vmax.f32 %v1811_v5, 0.0 }
 0xbae   : > { %v1816_v20 = vmax.f32 %v1812_v6, 0.0 }
 0xbaf   : > { %v1831_v21 = vpack.c.bf16 %v1815_v18, %v1813_v17 }
 0xbb0   : > { %v1832_v22 = vpack.c.bf16 %v1816_v20, %v1814_v19  ;;  %v1945_v27 = vpop.permute.xlu1 %1944 }
 0xbb2   : > { %1841 = vmatprep.subr.bf16.mxu0 %v1832_v22 }
 0xbb3   : > { %1842 = vmatpush1.bf16.msra.mxu0 %v1831_v21 }
 0xbb4   : > { %1892 = vmatprep.subr.bf16.mxu0 %v1828_v33 }
 0xbb6   : > { %2058 = vmatmul.mubr.msk.bf16.vlgmr.msra.gmra.mrb[16].mxu0 %vm732_vm1, %v2152_v48 }
 0xbb7   : > { %1893 = vmatpush1.bf16.msra.mxu0 %v1827_v29  ;;  %1924 = vmatprep.mubr.bf16.mxu0 %v2169_v3 }
 0xbc2   : > { %2060 = vmatmul.mubr.msk.bf16.vlgmr.msra.gmra.mrb[16].mxu0 %vm732_vm1, %v2153_v46 }
 0xc95   : > { %v1926_v49 = vpop.f32.mrb[16].mxu0 }
 0xc96   : > { %v1947_v23 = vadd.f32 %v1940_v47, %v1926_v49  ;;  %v1928_v26 = vpop.f32.mrb[17].mxu0 }
 0xc97   : > { %v1948_v24 = vadd.f32 %v1940_v47, %v1928_v26  ;;  %v1930_v25 = vpop.f32.mrb[18].mxu0 }
 0xc98   : > { %1951 = vst [vmem:[%s703_s2] sm:$0xff] %v1947_v23  ;;  %v1949_v3 = vadd.f32 %v1945_v27, %v1930_v25  ;;  %v1932_v28 = vpop.f32.mrb[19].mxu0 }
 0xc99   : > { %1952 = vst [vmem:[%s703_s2 + $0x8] sm:$0xff] %v1948_v24  ;;  %v1950_v29 = vadd.f32 %v1945_v27, %v1932_v28 }
 0xc9a   : > { %1953 = vst [vmem:[%s703_s2 + $0x10] sm:$0xff] %v1949_v3 }
 0xc9b   : > { %1954 = vst [vmem:[%s703_s2 + $0x18] sm:$0xff] %v1950_v29 }
 0xc9c PF: > { %s32_s3 = sadd.s32 1, %s2164_s3  }
 0xc9d   : > { %p29_p4 = scmp.ge.s32.totalorder %s32_s3, 4  }
 0xc9f   :  { %31 = sbr.rel (!%p29_p4) target bundleno = 8 (0x8), region = 141 }

</bundles_post_ra>
